<compile_context>
chip_gen: v7x
topology: tpu7x:2x2x1
jax: 0.10.0
libtpu: 0.0.40
codegen_flags: <defaults>
</compile_context>

<pallas_src>
import jax
import jax.numpy as jnp
from jax.experimental import pallas as pl
from jax.experimental.pallas import tpu as pltpu


def _mlp_kernel(xt_ref, w1_ref, b1_ref, w2_ref, b2_ref, w3_ref, b3_ref, o_ref):
    # Whole MLP fused; everything is feature-major so batch fills the lanes.
    xt = xt_ref[...].astype(jnp.float32)                              # (4,  Bt)

    h1 = jnp.dot(w1_ref[...], xt, preferred_element_type=jnp.float32)  # (16, Bt)
    h1 = jnp.maximum(h1 + b1_ref[...], 0.0)

    h2 = jnp.dot(w2_ref[...], h1, preferred_element_type=jnp.float32)  # (64, Bt)
    h2 = jnp.maximum(h2 + b2_ref[...], 0.0)

    y = jnp.dot(w3_ref[...], h2, preferred_element_type=jnp.float32)   # (1,  Bt)
    y = y + b3_ref[...]

    o_ref[...] = y.astype(o_ref.dtype)                                  # lane-dense store


def _pick_block_b(B):
    # Prefer lane-dense (multiple of 128) tiles with at least 2 grid steps so
    # the pipeline overlaps DMA/compute and v7x can split across its 2 TCs.
    for cand in (2048, 1024, 512, 256, 128):
        if B % cand == 0 and B // cand >= 2:
            return cand
    for cand in (2048, 1024, 512, 256, 128):
        if B % cand == 0:
            return cand
    return B  # full-array block (always legal per BlockSpec rules)


def nn_regressor_forward(x, params, *, block_b=None):
    """x: (B, 4) float32 -> (B, 1) float32.

    params = (w1, b1, w2, b2, w3, b3) with weights in PyTorch (out, in) layout
    and biases of shape (out, 1).
    """
    w1, b1, w2, b2, w3, b3 = params
    B = x.shape[0]
    if block_b is None:
        block_b = _pick_block_b(B)

    # Guard the (8,128) BlockSpec constraint up front (clear error vs Mosaic
    # lowering failure): the lane dim (batch) must be a multiple of 128 or the
    # full batch.
    assert B % block_b == 0, f"block_b={block_b} must divide B={B}"
    assert block_b % 128 == 0 or block_b == B, (
        f"block_b={block_b} must be a multiple of 128 (or equal to B={B})")

    grid = (B // block_b,)

    # Pre-transpose x so the batch axis is the (fast) lane axis of every tile.
    xt = x.T  # (4, B)

    # Weights/biases are tiny: full-array blocks replicated across the grid.
    def rep(shape):
        return pl.BlockSpec(shape, lambda i: (0, 0))

    out_t = pl.pallas_call(
        _mlp_kernel,
        out_shape=jax.ShapeDtypeStruct((1, B), jnp.float32),
        grid=grid,
        in_specs=[
            pl.BlockSpec((4, block_b), lambda i: (0, i)),   # xT tile over batch (lane-dense)
            rep((16, 4)),    # w1 (out, in)
            rep((16, 1)),    # b1
            rep((64, 16)),   # w2
            rep((64, 1)),    # b2
            rep((1, 64)),    # w3
            rep((1, 1)),     # b3
        ],
        out_specs=pl.BlockSpec((1, block_b), lambda i: (0, i)),  # lane-dense output
        compiler_params=pltpu.CompilerParams(
            dimension_semantics=("parallel",)
        ),
    )(xt, w1, b1, w2, b2, w3, b3)

    # (1, B) -> (B, 1); same row-major data order, so this is free.
    return out_t.reshape(B, 1)


def init_params(key):
    """Deterministic PyTorch-style init: U(-1/sqrt(fan_in), 1/sqrt(fan_in)).

    Weights stored as (out_features, in_features) (PyTorch layout),
    biases as (out_features, 1) for feature-major broadcasting.
    """
    dims = [(4, 16), (16, 64), (64, 1)]
    params = []
    for (fan_in, fan_out) in dims:
        key, kw, kb = jax.random.split(key, 3)
        bound = 1.0 / jnp.sqrt(float(fan_in))
        w = jax.random.uniform(kw, (fan_out, fan_in), jnp.float32, -bound, bound)
        b = jax.random.uniform(kb, (fan_out, 1), jnp.float32, -bound, bound)
        params.extend([w, b])
    return tuple(params)


def reference_forward(x, params):
    """Plain-JAX reference matching PyTorch semantics: h = relu(x @ W.T + b)."""
    w1, b1, w2, b2, w3, b3 = params
    h = jnp.maximum(x @ w1.T + b1.T, 0.0)
    h = jnp.maximum(h @ w2.T + b2.T, 0.0)
    return h @ w3.T + b3.T


if __name__ == "__main__":
    key = jax.random.PRNGKey(0)
    kp, kx = jax.random.split(key)

    params = init_params(kp)
    B = 256  # small demo batch; auto tile picker -> block_b=128, grid=(2,)
    x = jax.random.normal(kx, (B, 4), dtype=jnp.float32)

    out = nn_regressor_forward(x, params)
    out = jax.block_until_ready(out)

    ref = reference_forward(x, params)
    assert out.shape == (B, 1)
    assert jnp.allclose(out, ref, atol=1e-4, rtol=1e-4)

    print("KERNEL_OK")
</pallas_src>

<mosaic_0001>
module attributes {stable_mosaic.version = 11 : i64} {
  func.func @_mlp_kernel(%arg0: i32, %arg1: memref<4x128xf32, #tpu.memory_space<vmem>>, %arg2: memref<16x4xf32, #tpu.memory_space<vmem>>, %arg3: memref<16x1xf32, #tpu.memory_space<vmem>>, %arg4: memref<64x16xf32, #tpu.memory_space<vmem>>, %arg5: memref<64x1xf32, #tpu.memory_space<vmem>>, %arg6: memref<1x64xf32, #tpu.memory_space<vmem>>, %arg7: memref<1x1xf32, #tpu.memory_space<vmem>>, %arg8: memref<1x128xf32, #tpu.memory_space<vmem>>) attributes {dimension_semantics = [#tpu.dimension_semantics<parallel>], iteration_bounds = array<i64: 2>, scalar_prefetch = 0 : i64, scratch_operands = 0 : i64, tpu.core_type = #tpu.core_type<tc>, window_params = [{transform_indices = @transform_0, window_bounds = array<i64: 4, 128>}, {pipeline_mode = #tpu.pipeline_mode<synchronous>, transform_indices = @transform_1, window_bounds = array<i64: 16, 4>}, {pipeline_mode = #tpu.pipeline_mode<synchronous>, transform_indices = @transform_2, window_bounds = array<i64: 16, 1>}, {pipeline_mode = #tpu.pipeline_mode<synchronous>, transform_indices = @transform_3, window_bounds = array<i64: 64, 16>}, {pipeline_mode = #tpu.pipeline_mode<synchronous>, transform_indices = @transform_4, window_bounds = array<i64: 64, 1>}, {pipeline_mode = #tpu.pipeline_mode<synchronous>, transform_indices = @transform_5, window_bounds = array<i64: 1, 64>}, {pipeline_mode = #tpu.pipeline_mode<synchronous>, transform_indices = @transform_6, window_bounds = array<i64: 1, 1>}, {transform_indices = @transform_7, window_bounds = array<i64: 1, 128>}]} {
    %c0 = arith.constant 0 : index
    %c0_0 = arith.constant 0 : index
    %0 = vector.load %arg1[%c0, %c0_0] : memref<4x128xf32, #tpu.memory_space<vmem>>, vector<4x128xf32>
    %c0_1 = arith.constant 0 : index
    %c0_2 = arith.constant 0 : index
    %1 = vector.load %arg2[%c0_1, %c0_2] : memref<16x4xf32, #tpu.memory_space<vmem>>, vector<16x4xf32>
    %cst = arith.constant dense<0.000000e+00> : vector<16x128xf32>
    %2 = tpu.matmul %1, %0, %cst {dimension_numbers = #tpu.dot_dimension_numbers<[1], [0], [0], [1], [0, 0, 1, 1], [], []>} : vector<16x4xf32>, vector<4x128xf32>, vector<16x128xf32> -> vector<16x128xf32>
    %c0_3 = arith.constant 0 : index
    %c0_4 = arith.constant 0 : index
    %3 = vector.load %arg3[%c0_3, %c0_4] : memref<16x1xf32, #tpu.memory_space<vmem>>, vector<16x1xf32>
    %4 = vector.broadcast %3 : vector<16x1xf32> to vector<16x128xf32>
    %5 = arith.addf %2, %4 : vector<16x128xf32>
    %cst_5 = arith.constant 0.000000e+00 : f32
    %6 = vector.broadcast %cst_5 : f32 to vector<16x128xf32>
    %7 = arith.maximumf %5, %6 : vector<16x128xf32>
    %c0_6 = arith.constant 0 : index
    %c0_7 = arith.constant 0 : index
    %8 = vector.load %arg4[%c0_6, %c0_7] : memref<64x16xf32, #tpu.memory_space<vmem>>, vector<64x16xf32>
    %cst_8 = arith.constant dense<0.000000e+00> : vector<64x128xf32>
    %9 = tpu.matmul %8, %7, %cst_8 {dimension_numbers = #tpu.dot_dimension_numbers<[1], [0], [0], [1], [0, 0, 1, 1], [], []>} : vector<64x16xf32>, vector<16x128xf32>, vector<64x128xf32> -> vector<64x128xf32>
    %c0_9 = arith.constant 0 : index
    %c0_10 = arith.constant 0 : index
    %10 = vector.load %arg5[%c0_9, %c0_10] : memref<64x1xf32, #tpu.memory_space<vmem>>, vector<64x1xf32>
    %11 = vector.broadcast %10 : vector<64x1xf32> to vector<64x128xf32>
    %12 = arith.addf %9, %11 : vector<64x128xf32>
    %cst_11 = arith.constant 0.000000e+00 : f32
    %13 = vector.broadcast %cst_11 : f32 to vector<64x128xf32>
    %14 = arith.maximumf %12, %13 : vector<64x128xf32>
    %c0_12 = arith.constant 0 : index
    %c0_13 = arith.constant 0 : index
    %15 = vector.load %arg6[%c0_12, %c0_13] : memref<1x64xf32, #tpu.memory_space<vmem>>, vector<1x64xf32>
    %cst_14 = arith.constant dense<0.000000e+00> : vector<1x128xf32>
    %16 = tpu.matmul %15, %14, %cst_14 {dimension_numbers = #tpu.dot_dimension_numbers<[1], [0], [0], [1], [0, 0, 1, 1], [], []>} : vector<1x64xf32>, vector<64x128xf32>, vector<1x128xf32> -> vector<1x128xf32>
    %c0_15 = arith.constant 0 : index
    %c0_16 = arith.constant 0 : index
    %17 = vector.load %arg7[%c0_15, %c0_16] : memref<1x1xf32, #tpu.memory_space<vmem>>, vector<1x1xf32>
    %18 = vector.broadcast %17 : vector<1x1xf32> to vector<1x128xf32>
    %19 = arith.addf %16, %18 : vector<1x128xf32>
    %c0_17 = arith.constant 0 : index
    %c0_18 = arith.constant 0 : index
    %20 = vector.load %arg8[%c0_17, %c0_18] : memref<1x128xf32, #tpu.memory_space<vmem>>, vector<1x128xf32>
    tpu.vector_store %arg8[%c0_17, %c0_18], %19 {strides = array<i32>} : memref<1x128xf32, #tpu.memory_space<vmem>>, vector<1x128xf32>,
    return
  }
  func.func @transform_0(%arg0: i32) -> (i32, i32) {
    %c0_i32 = arith.constant 0 : i32
    %c0_i32_0 = arith.constant 0 : i32
    return %c0_i32, %arg0 : i32, i32
  }
  func.func @transform_1(%arg0: i32) -> (i32, i32) {
    %c0_i32 = arith.constant 0 : i32
    %c0_i32_0 = arith.constant 0 : i32
    %c0_i32_1 = arith.constant 0 : i32
    return %c0_i32, %c0_i32_0 : i32, i32
  }
  func.func @transform_2(%arg0: i32) -> (i32, i32) {
    %c0_i32 = arith.constant 0 : i32
    %c0_i32_0 = arith.constant 0 : i32
    %c0_i32_1 = arith.constant 0 : i32
    return %c0_i32, %c0_i32_0 : i32, i32
  }
  func.func @transform_3(%arg0: i32) -> (i32, i32) {
    %c0_i32 = arith.constant 0 : i32
    %c0_i32_0 = arith.constant 0 : i32
    %c0_i32_1 = arith.constant 0 : i32
    return %c0_i32, %c0_i32_0 : i32, i32
  }
  func.func @transform_4(%arg0: i32) -> (i32, i32) {
    %c0_i32 = arith.constant 0 : i32
    %c0_i32_0 = arith.constant 0 : i32
    %c0_i32_1 = arith.constant 0 : i32
    return %c0_i32, %c0_i32_0 : i32, i32
  }
  func.func @transform_5(%arg0: i32) -> (i32, i32) {
    %c0_i32 = arith.constant 0 : i32
    %c0_i32_0 = arith.constant 0 : i32
    %c0_i32_1 = arith.constant 0 : i32
    return %c0_i32, %c0_i32_0 : i32, i32
  }
  func.func @transform_6(%arg0: i32) -> (i32, i32) {
    %c0_i32 = arith.constant 0 : i32
    %c0_i32_0 = arith.constant 0 : i32
    %c0_i32_1 = arith.constant 0 : i32
    return %c0_i32, %c0_i32_0 : i32, i32
  }
  func.func @transform_7(%arg0: i32) -> (i32, i32) {
    %c0_i32 = arith.constant 0 : i32
    %c0_i32_0 = arith.constant 0 : i32
    return %c0_i32, %arg0 : i32, i32
  }
}

</mosaic_0001>

<bundles_post_ra>
// kernel: tpu_custom_call.1
= control target key start
LH: loop header
LB: loop body
LE: loop exit
PB: predicated region body
PF: predicated region fallthrough
CT: control target
= control target key end

     0   :  { %s1154_s0 = inlined_call_operand.vmem [shape: f32[4,256], index: 0, kind: input, shape index: {}]   ;;  %s1155_s1 = inlined_call_operand.vmem [shape: f32[16,4], index: 1, kind: input, shape index: {}]   ;;  %s1156_s2 = inlined_call_operand.vmem [shape: f32[16,1], index: 2, kind: input, shape index: {}]   ;;  %s1157_s3 = inlined_call_operand.vmem [shape: f32[64,16], index: 3, kind: input, shape index: {}]   ;;  %s1158_s4 = inlined_call_operand.vmem [shape: f32[64,1], index: 4, kind: input, shape index: {}]   ;;  %s1159_s5 = inlined_call_operand.vmem [shape: f32[1,64], index: 5, kind: input, shape index: {}]   ;;  %s1160_s6 = inlined_call_operand.<no memory space> [shape: f32[1,1], index: 6, kind: input, shape index: {}]   ;;  %s1161_s7 = inlined_call_operand.hbm [shape: f32[1,256], index: 7, kind: output, shape index: {}]  }
   0x1   :  { %v12_v0 = vstv %s1160_s6 }
   0x2   :  { %13 = vst [vmem:[#allocation2] sm:$0x1] %v12_v0 }
   0x3   :  { %14 = vsyncpa [#allocation4], 0 }
   0x4   :  { %16 = vsyncpa [#allocation4 + $0x1], 0  ;;  %s981_s26 = smov 0   ;;  %s983_s27 = smov 0  }
   0x5   :  { %s985_s28 = smov 0   ;;  %s987_s29 = smov 0  }
   0x6 LB: > { %s1002_s6 = sadd.s32 4294967295, %s931_s29   ;;  %s726_s30 = sadd.s32 4294967294, %s931_s29   ;;  %s931_s29 = sphi %s987_s29, %s1167_s29   ;;  %s927_s28 = sphi %s985_s28, %s1166_s28   ;;  %s923_s27 = sphi %s983_s27, %s1165_s27   ;;  %s919_s26 = sphi %s981_s26, %s1164_s26  }
   0x7   : > { %s1006_s8 = sadd.s32 1, %s931_s29   ;;  %s181_s9 = sadd.s32 1, %s927_s28 }
   0x8   : > { %s178_s10 = ssub.s32 %s931_s29, %s1006_s8  ;;  %p191_p0 = scmp.ne.s32.totalorder %s927_s28, %s923_s27 }
   0x9   : > { %p179_p1 = scmp.eq.s32.totalorder %s178_s10, 0  ;;  %p192_p2 = scmp.eq.s32.totalorder %s1002_s6, 1 }
   0xa   : > { %p197_p3 = scmp.ne.s32.totalorder %s923_s27, %s919_s26  ;;  %p198_p4 = scmp.eq.s32.totalorder %s726_s30, 1 }
   0xb   : > { %s1017_s11 = scalar_select %p179_p1, %s927_s28, %s181_s9  }
   0xc   : > { %p1019_p5 = por %p192_p2, %p191_p0  ;;  %p1023_p6 = por %p198_p4, %p197_p3 }
   0xd   : > { %p729_p7 = scmp.ge.s32.totalorder %s931_s29, 1  ;;  %p241_p8 = scmp.lt.s32.totalorder %s931_s29, 3 }
   0xf   : > { %p242_p9 = pnand %p729_p7, %p241_p8 }
  0x10   : > { %p271_p10 = scmp.lt.s32.totalorder (!%p242_p9), %s1002_s6, 1  ;;  %v276_v1 = vld [vmem:[%s1155_s1] sm:$0xff] (!%p242_p9)  ;;  %vm290_vm0 = vcmask (!%p242_p9), 31744   ;;  %v933_v2 = vmov (!%p242_p9), 0   ;;  %v279_v4 = vld [vmem:[%s1156_s2 + $0x8] sm:$0xff] (!%p242_p9)  ;;  %vm297_vm1 = vcmask (!%p242_p9), 1043456  }
  0x11   : > { %245 = sbr.rel (%p242_p9) target bundleno = 716 (0x2cc), region = 48  ;;  %770 = vmatprep.mubr.msk.f32.mxu0 (!%p242_p9), %vm290_vm0, %v276_v1  ;;  %867 = vset.pattern.permute.xlu0 (!%p242_p9), %v933_v2  ;;  %v278_v3 = vld [vmem:[%s1156_s2] sm:$0xff] (!%p242_p9)  ;;  %v277_v6 = vld [vmem:[%s1155_s1 + $0x8] sm:$0xff] (!%p242_p9)  ;;  %v388_v7 = vld [vmem:[%s1158_s4 + $0x10] sm:$0xff] (!%p242_p9)  ;;  %vm434_vm2 = vcmask (!%p242_p9), 130048   ;;  %v934_v33 = vmov (!%p242_p9), 0.0|0.0  }
  0x12   : > { %282 = vperm.xlu0 (!%p242_p9), %867, %v278_v3   ;;  %868 = vset.pattern.permute.xlu1 (!%p242_p9), %v933_v2  ;;  %v390_v8 = vld [vmem:[%s1158_s4 + $0x20] sm:$0xff] (!%p242_p9)  ;;  %v392_v9 = vld [vmem:[%s1158_s4 + $0x30] sm:$0xff] (!%p242_p9)  ;;  %v387_v13 = vld [vmem:[%s1158_s4 + $0x8] sm:$0xff] (!%p242_p9)  ;;  %vm935_vm3 = vmmov (!%p242_p9), 0   ;;  %v936_v34 = vmov (!%p242_p9), 0.0   ;;  %vm583_vm4 = vcmask (!%p242_p9), 523264  }
  0x13   : > { %v573_v10 = vld [vmem:[#allocation2] sm:$0x1] (!%p242_p9)  ;;  %v389_v14 = vld [vmem:[%s1158_s4 + $0x18] sm:$0xff] (!%p242_p9)  ;;  %v391_v15 = vld [vmem:[%s1158_s4 + $0x28] sm:$0xff] (!%p242_p9)  ;;  %s269_s16 = sand.u32 (!%p242_p9), 1, %s923_s27   ;;  %s743_s17 = sshll.u32 (!%p242_p9), %s1002_s6, 4 }
  0x14   : > { %v378_v11 = vld [vmem:[%s1157_s3] sm:$0xff] (!%p242_p9)  ;;  %v393_v16 = vld [vmem:[%s1158_s4 + $0x38] sm:$0xff] (!%p242_p9)  ;;  %v379_v26 = vld [vmem:[%s1157_s3 + $0x8] sm:$0xff] (!%p242_p9)  ;;  %s1112_s22 = scalar_lea.hbm (!%p242_p9), %s1161_s7, %s743_s17  ;;  %s659_s23 = scalar_lea.sflag (!%p242_p9), [#allocation4], %s269_s16 }
  0x15   : > { %777 = vmatprep.mubr.msk.f32.mxu1 (!%p242_p9), %vm434_vm2, %v378_v11  ;;  %v386_v12 = vld [vmem:[%s1158_s4] sm:$0xff] (!%p242_p9)  ;;  %v380_v27 = vld [vmem:[%s1157_s3 + $0x10] sm:$0xff] (!%p242_p9)  ;;  %v381_v28 = vld [vmem:[%s1157_s3 + $0x18] sm:$0xff] (!%p242_p9) }
  0x16   : > { %287 = vperm.xlu0 (!%p242_p9), %867, %v279_v4   ;;  %396 = vperm.xlu1 (!%p242_p9), %868, %v386_v12   ;;  %v382_v29 = vld [vmem:[%s1157_s3 + $0x20] sm:$0xff] (!%p242_p9)  ;;  %v383_v30 = vld [vmem:[%s1157_s3 + $0x28] sm:$0xff] (!%p242_p9)  ;;  %v384_v31 = vld [vmem:[%s1157_s3 + $0x30] sm:$0xff] (!%p242_p9) }
  0x17   : > { %v385_v32 = vld [vmem:[%s1157_s3 + $0x38] sm:$0xff] (!%p242_p9) }
  0x18   : > { %s272_s18 = scalar_select %p271_p10, %s1002_s6, 1 }
  0x19   : > { %s937_s6 = smov [#allocation3]  }
  0x1a   : > { %s730_s21 = sshll.u32 %s272_s18, 2  ;;  %406 = vperm.xlu0 %867, %v388_v7   ;;  %401 = vperm.xlu1 %868, %v387_v13   ;;  %v572_v7 = vld [vmem:[%s1159_s5] sm:$0x1]  ;;  %s270_s18 = scalar_lea.vmem [#allocation3], %s269_s16 }
  0x1b   : > { %s274_s24 = scalar_lea.vmem %s1154_s0, %s730_s21  ;;  %s671_s19 = sshll.u32 %s270_s18, 4  ;;  %s1114_s19 = int_to_ptr.vmem [resolvable:$true] %s671_s19 }
  0x1c   : > { %v275_v5 = vld [vmem:[%s274_s24] sm:$0xf]  ;;  %s869_s24 = scalar_lea.vmem %s1114_s19, 16  ;;  %s873_s25 = sshll.u32 %s937_s6, 4  ;;  %s874_s25 = int_to_ptr.vmem [resolvable:$false] %s873_s25 }
  0x1d   : > { %768 = vmatprep.subr.msk.mxu0 %vm297_vm1, %v275_v5  ;;  %p870_p11 = scmp.ne.s32.totalorder %s1114_s19, %s869_s24  ;;  %s875_s30 = scalar_lea.vmem %s874_s25, 32 }
  0x1e   : > { %769 = vmatpush3.msk.msra.mxu0 %vm297_vm1, %v275_v5  ;;  %416 = vperm.xlu0 %867, %v390_v8   ;;  %v579_v8 = vlaneseq  ;;  %p876_p0 = scmp.lt.s32.totalorder %s1114_s19, %s874_s25  ;;  %p877_p1 = scmp.lt.s32.totalorder %s875_s30, %s869_s24 }
  0x1f   : > { %771 = vmatmul.mubr.msk.f32.vlgmr.msra.gmra.mrb[0].mxu0 %vm290_vm0, %v277_v6  ;;  %411 = vperm.xlu1 %868, %v389_v14   ;;  %p871_p12 = pnand %p870_p11, %p1019_p5 }
  0x20   : > { %812 = vmatprep.subr.bf16.mxu0 %v934_v33  ;;  %805 = vmatprep.mubr.msk.f32.mxu0 %vm935_vm3, %v936_v34  ;;  %p878_p2 = por %p877_p1, %p876_p0 }
  0x21   : > { %p872_p13 = pneg %p871_p12 }
  0x22   : > { %426 = vperm.xlu0 %867, %v392_v9   ;;  %v580_v9 = vshrl.u32 %v579_v8, 7 }
  0x23   : > { %421 = vperm.xlu1 %868, %v391_v15   ;;  %p879_p3 = pnand %p878_p2, %p872_p13 }
  0x26   : > { %576 = vperm.xlu0 %867, %v573_v10   ;;  %v581_v10 = vsub.s32 0, %v580_v9 }
  0x27   : > { %431 = vperm.xlu1 %868, %v393_v16  }
  0x91   : > { %v283_v17 = vpop.permute.xlu0 %282 }
  0x95   : > { %v288_v18 = vpop.permute.xlu0 %287  ;;  %v397_v35 = vpop.permute.xlu1 %396 }
  0x99   : > { %v402_v36 = vpop.permute.xlu1 %401  ;;  %v407_v39 = vpop.permute.xlu0 %406 }
  0x9d   : > { %v417_v51 = vpop.permute.xlu0 %416 }
  0x9e   : > { %v412_v37 = vpop.permute.xlu1 %411 }
  0xa1   : > { %v427_v63 = vpop.permute.xlu0 %426 }
  0xa2   : > { %v422_v48 = vpop.permute.xlu1 %421 }
  0xa5   : > { %v577_v11 = vpop.permute.xlu0 %576 }
  0xa6   : > { %v432_v60 = vpop.permute.xlu1 %431  ;;  %v582_v12 = vrot.slane %v577_v11, %v581_v10 }
  0xf2   : > { %v772_v19 = vpop.f32.mrb[0].mxu0 }
  0xf3   : > { %v373_v20 = vadd.f32 %v772_v19, %v288_v18  ;;  %v367_v21 = vpop.f32.mrb[1].mxu0 }
  0xf4   : > { %v368_v22 = vadd.f32 %v367_v21, %v283_v17 }
  0xf5   : > { %v377_v23 = vmax.f32 %v373_v20, 0.0 }
  0xf6   : > { %v376_v24 = vmax.f32 %v368_v22, 0.0 }
  0xf8   : > { %v808_v25 = vpack.c.bf16 %v377_v23, %v376_v24 }
  0xfa   : > { %809 = vmatprep.subr.bf16.mxu1 %v808_v25 }
  0xfb   : > { %811 = vmatpush3.bf16.msra.mxu1 %v808_v25 }
  0xfe   : > { %778 = vmatmul.mubr.msk.f32.vlgmr.msra.gmra.mrb[0].mxu1 %vm434_vm2, %v379_v26 }
  0xff   : > { %780 = vmatprep.mubr.msk.f32.mxu1 %vm434_vm2, %v380_v27 }
 0x102   : > { %781 = vmatmul.mubr.msk.f32.gmra.mrb[2].mxu1 %vm434_vm2, %v381_v28 }
 0x103   : > { %783 = vmatprep.mubr.msk.f32.mxu1 %vm434_vm2, %v382_v29 }
 0x106   : > { %784 = vmatmul.mubr.msk.f32.gmra.mrb[4].mxu1 %vm434_vm2, %v383_v30 }
 0x107   : > { %786 = vmatprep.mubr.msk.f32.mxu1 %vm434_vm2, %v384_v31 }
 0x10a   : > { %787 = vmatmul.mubr.msk.f32.gmra.mrb[6].mxu1 %vm434_vm2, %v385_v32 }
 0x1d1   : > { %v779_v38 = vpop.f32.mrb[0].mxu1 }
 0x1d2   : > { %v531_v40 = vadd.f32 %v779_v38, %v402_v36  ;;  %v525_v41 = vpop.f32.mrb[1].mxu1 }
 0x1d3   : > { %v526_v42 = vadd.f32 %v525_v41, %v397_v35 }
 0x1d4   : > { %v565_v43 = vmax.f32 %v531_v40, 0.0 }
 0x1d5   : > { %v564_v44 = vmax.f32 %v526_v42, 0.0  ;;  %v782_v45 = vpop.f32.mrb[2].mxu1 }
 0x1d6   : > { %v541_v46 = vadd.f32 %v782_v45, %v412_v37  ;;  %v535_v47 = vpop.f32.mrb[3].mxu1 }
 0x1d7   : > { %v813_v49 = vpack.c.bf16 %v565_v43, %v564_v44  ;;  %v536_v50 = vadd.f32 %v535_v47, %v407_v39 }
 0x1d8   : > { %v567_v52 = vmax.f32 %v541_v46, 0.0 }
 0x1d9   : > { %v566_v53 = vmax.f32 %v536_v50, 0.0  ;;  %v785_v54 = vpop.f32.mrb[4].mxu1  ;;  %814 = vmatpush3.bf16.msra.mxu0 %v813_v49 }
 0x1da   : > { %v551_v55 = vadd.f32 %v785_v54, %v422_v48  ;;  %v545_v56 = vpop.f32.mrb[5].mxu1  ;;  %815 = vmatprep.subr.bf16.mxu0 %v934_v33 }
 0x1db   : > { %v816_v57 = vpack.c.bf16 %v567_v52, %v566_v53  ;;  %v546_v58 = vadd.f32 %v545_v56, %v417_v51 }
 0x1dc   : > { %v569_v59 = vmax.f32 %v551_v55, 0.0 }
 0x1dd   : > { %v568_v61 = vmax.f32 %v546_v58, 0.0  ;;  %v788_v62 = vpop.f32.mrb[6].mxu1  ;;  %817 = vmatpush3.bf16.msra.mxu0 %v816_v57 }
 0x1de   : > { %v561_v0 = vadd.f32 %v788_v62, %v432_v60  ;;  %v555_v1 = vpop.f32.mrb[7].mxu1  ;;  %818 = vmatprep.subr.bf16.mxu0 %v934_v33 }
 0x1df   : > { %v819_v2 = vpack.c.bf16 %v569_v59, %v568_v61  ;;  %v556_v3 = vadd.f32 %v555_v1, %v427_v63 }
 0x1e0   : > { %v571_v4 = vmax.f32 %v561_v0, 0.0 }
 0x1e1   : > { %v570_v5 = vmax.f32 %v556_v3, 0.0  ;;  %820 = vmatpush3.bf16.msra.mxu0 %v819_v2 }
 0x1e2   : > { %821 = vmatprep.subr.bf16.mxu0 %v934_v33 }
 0x1e3   : > { %v822_v6 = vpack.c.bf16 %v571_v4, %v570_v5 }
 0x1e5   : > { %823 = vmatpush3.bf16.msra.mxu0 %v822_v6 }
 0x1e8   : > { %806 = vmatmul.mubr.msk.f32.vlgmr.msra.gmra.mrb[2].mxu0 %vm583_vm4, %v572_v7 }
 0x2bb   : > { %v653_v13 = vpop.f32.mrb[2].mxu0 }
 0x2bc   : > { %v654_v14 = vadd.f32 %v653_v13, %v582_v12  ;;  %v807_v15 = vpop.f32.mrb[3].mxu0 }
 0x2be   : > { %657 = vst [vmem:[%s270_s18] sm:$0x1] %v654_v14 }
 0x2bf   : > { %882 = shalt.err (!%p879_p3)
}
 0x2c0   : > { %s883_s9 = scalar_lea.hbm %s1112_s22, 16  ;;  %s887_s15 = scalar_lea.hbm %s1161_s7, 32 }
 0x2c1   : > { %p884_p4 = scmp.ne.s32.totalorder %s1112_s22, %s883_s9  ;;  %p888_p9 = scmp.lt.u32.totalorder %s1112_s22, %s1161_s7 }
 0x2c2   : > { %p889_p10 = scmp.lt.u32.totalorder %s887_s15, %s883_s9  ;;  %p891_p12 = scmp.lt.u32.totalorder %s883_s9, %s1112_s22 }
 0x2c3   : > { %p885_p7 = pnand %p884_p4, %p1019_p5 }
 0x2c4   : > { %p890_p11 = por %p889_p10, %p888_p9 }
 0x2c5   : > { %p886_p8 = pneg %p885_p7 }
 0x2c6   : > { %p892_p13 = por %p891_p12, %p890_p11 }
 0x2c8   : > { %p893_p0 = pnand %p892_p13, %p886_p8 }
 0x2ca   : > { %896 = shalt.err (!%p893_p0)
}
 0x2cb   : > { %824 = dma.vmem_to_hbm [thread:$0]  (%p1019_p5), %s1114_s19, 16, %s1112_s22, %s659_s23  }
 0x2cc PF: > { %p830_p1 = scmp.ge.s32.totalorder %s931_s29, 2  ;;  %s683_s18 = sand.u32 1, %s919_s26  }
 0x2cd   : > { %s684_s20 = scalar_lea.sflag [#allocation4], %s683_s18 }
 0x2ce   : > { %p827_p2 = pnand %p830_p1, %p1023_p6 }
 0x2d0   : > { %914 = dma.done.wait (!%p827_p2), %s684_s20, 16  }
 0x2d1   : > { %916 = vsyncadd (!%p827_p2), %s684_s20, 4294967280  ;;  %p19_p3 = scmp.ge.s32.totalorder %s1006_s8, 4   ;;  %s1164_s26 = smov %s923_s27 }
 0x2d2   : > { %s1165_s27 = smov %s927_s28  ;;  %s1166_s28 = smov %s1017_s11 }
 0x2d3   : > { %s1167_s29 = smov %s1006_s8  ;;  %21 = sbr.rel (!%p19_p3) target bundleno = 6 (0x6), region = 83 }
 0x2da   :  { %688 = vsyncpa [#allocation4], 1 }
 0x2db   :  { %690 = vsyncpa [#allocation4 + $0x1], 1 }

</bundles_post_ra>
